<compile_context>
chip_gen: v6e
topology: v6e:2x2x1
jax: 0.10.0
libtpu: 0.0.40
codegen_flags: <defaults>
</compile_context>

<pallas_src>
import functools
import math

import jax
import jax.numpy as jnp
from jax.experimental import pallas as pl
from jax.experimental.pallas import tpu as pltpu


def _attention_pooling_kernel(q_ref, x_ref, o_ref, m_sc, l_sc, acc_sc, *,
                              seq_len, seq_block, ragged):
    # q_ref:   (Bt, D)      f32 pre-projected & pre-scaled query
    # x_ref:   (Bt, Ts, D)  hidden-state tile (input dtype)
    # o_ref:   (Bt, D)      pooled output (written on the last S step)
    # m_sc:    (Bt, 1)      f32 running max
    # l_sc:    (Bt, 1)      f32 running softmax denominator
    # acc_sc:  (Bt, D)      f32 running weighted sum
    s_idx = pl.program_id(1)

    @pl.when(s_idx == 0)
    def _():
        m_sc[...] = jnp.full(m_sc.shape, -jnp.inf, jnp.float32)
        l_sc[...] = jnp.zeros(l_sc.shape, jnp.float32)
        acc_sc[...] = jnp.zeros(acc_sc.shape, jnp.float32)

    q = q_ref[...]                                   # (Bt, D) f32
    x = x_ref[...]                                   # (Bt, Ts, D)

    if ragged:
        # Mask the ragged tail: zero out-of-range x rows so stale VMEM
        # (possibly NaN/Inf) can never reach the accumulator, and push
        # their scores to -inf so they get zero softmax weight.
        pos = s_idx * seq_block + jax.lax.broadcasted_iota(
            jnp.int32, (x.shape[0], x.shape[1]), 1)  # (Bt, Ts)
        valid = pos < seq_len
        x = jnp.where(valid[:, :, None], x, jnp.zeros_like(x))

    # scores = q . x over D  -> (Bt, Ts), f32.  Done on the VPU (multiply)
    # + XLU (lane reduce) to avoid an MXU-side transpose of the (Ts, D) tile.
    scores = jnp.sum(q[:, None, :] * x, axis=-1)

    if ragged:
        scores = jnp.where(valid, scores, -jnp.inf)

    # online softmax update
    m_prev = m_sc[...]                                           # (Bt, 1)
    m_new = jnp.maximum(m_prev, jnp.max(scores, axis=-1, keepdims=True))
    alpha = jnp.exp(m_prev - m_new)                              # (Bt, 1)
    p = jnp.exp(scores - m_new)                                  # (Bt, Ts)

    l_sc[...] = alpha * l_sc[...] + jnp.sum(p, axis=-1, keepdims=True)

    # weighted sum p @ x on the MXU (K = Ts on sublanes, N = D on lanes:
    # no transpose); squeeze the singleton M dim back out afterwards.
    wsum = jnp.einsum(
        "bqt,btd->bqd", p.astype(x.dtype)[:, None, :], x,
        preferred_element_type=jnp.float32)[:, 0, :]             # (Bt, D)
    acc_sc[...] = alpha * acc_sc[...] + wsum
    m_sc[...] = m_new

    @pl.when(s_idx == pl.num_programs(1) - 1)
    def _():
        # Exact divide: runs once per output tile, removes approx-recip error.
        o_ref[...] = (acc_sc[...] / l_sc[...]).astype(o_ref.dtype)


def attention_pooling(hidden_states, weight, bias, output_tokens,
                      *, seq_block=None, batch_block=None):
    B, S, D = hidden_states.shape
    dtype = hidden_states.dtype
    scale = 1.0 / math.sqrt(D)

    # Hoisted query projection, f32 accumulation, with the softmax scale
    # folded into its epilogue.  Keeps the D x D weight out of VMEM entirely.
    x0 = hidden_states[:, 0, :]
    q = (jnp.dot(x0, weight.T, preferred_element_type=jnp.float32)
         + bias.astype(jnp.float32)) * jnp.float32(scale)        # (B, D) f32

    # --- batch tile ----------------------------------------------------------
    # (8,128) rule on the 2-D q / output specs: Bt % 8 == 0 or Bt == B.
    # Prefer >= 2 batch grid steps (megacore sharding on v7x) when possible.
    if batch_block is not None:
        Bt = batch_block
    elif B % 8 == 0:
        Bt = 8
        for cand in (32, 16):
            if B % cand == 0 and (B // cand) >= 2:
                Bt = cand
                break
    else:
        Bt = B
    assert B % Bt == 0 and (Bt % 8 == 0 or Bt == B), "invalid batch_block"

    # --- sequence tile -------------------------------------------------------
    itemsize = jnp.dtype(dtype).itemsize
    budget = 8 * 1024 * 1024         # bytes per x block (Pallas double-buffers)
    if seq_block is not None:
        Ts = min(seq_block, S)
    else:
        max_ts = max(8, budget // max(1, Bt * D * itemsize))
        if S <= max_ts:
            Ts = S
        else:
            Ts = 8
            for mult in (256, 128, 8):   # prefer full MXU-depth K tiles
                t = (max_ts // mult) * mult
                if t >= mult:
                    Ts = t
                    break
    assert Ts % 8 == 0 or Ts == S, "seq_block must be a multiple of 8 (or S)"

    num_s = pl.cdiv(S, Ts)
    ragged = (S % Ts) != 0           # tail tile handled by masking in-kernel

    kernel = functools.partial(
        _attention_pooling_kernel, seq_len=S, seq_block=Ts, ragged=ragged)

    pooled = pl.pallas_call(
        kernel,
        out_shape=jax.ShapeDtypeStruct((B, D), dtype),
        grid_spec=pltpu.PrefetchScalarGridSpec(
            num_scalar_prefetch=0,
            grid=(B // Bt, num_s),
            in_specs=[
                pl.BlockSpec((Bt, D), lambda b, s: (b, 0)),        # q (f32)
                pl.BlockSpec((Bt, Ts, D), lambda b, s: (b, s, 0)), # x tiles
            ],
            out_specs=pl.BlockSpec((Bt, D), lambda b, s: (b, 0)),
            scratch_shapes=[
                pltpu.VMEM((Bt, 1), jnp.float32),   # running max
                pltpu.VMEM((Bt, 1), jnp.float32),   # running denominator
                pltpu.VMEM((Bt, D), jnp.float32),   # running weighted sum
            ],
        ),
        compiler_params=pltpu.CompilerParams(
            dimension_semantics=("parallel", "arbitrary"),
            vmem_limit_bytes=48 * 1024 * 1024,
        ),
    )(q, hidden_states)

    # torch's .expand(-1, output_tokens, -1) is a view; broadcast in the
    # wrapper instead of writing output_tokens identical rows from the kernel.
    return jnp.broadcast_to(pooled[:, None, :], (B, output_tokens, D))


def attention_pooling_ref(hidden_states, weight, bias, output_tokens):
    # pure-JAX reference for correctness
    q = hidden_states[:, 0:1, :] @ weight.T + bias               # (B, 1, D)
    scores = q @ jnp.swapaxes(hidden_states, -1, -2)
    scores = scores / math.sqrt(hidden_states.shape[-1])
    attn = jax.nn.softmax(scores, axis=-1)
    pooled = attn @ hidden_states                                # (B, 1, D)
    return jnp.broadcast_to(
        pooled, (pooled.shape[0], output_tokens, pooled.shape[-1]))


def _run_case(key, B, S, D, T, **kw):
    k_x, k_w, k_b = jax.random.split(key, 3)
    bound = 1.0 / math.sqrt(D)
    hidden_states = jax.random.normal(k_x, (B, S, D), dtype=jnp.float32)
    weight = jax.random.uniform(k_w, (D, D), jnp.float32, -bound, bound)
    bias = jax.random.uniform(k_b, (D,), jnp.float32, -bound, bound)

    out = attention_pooling(hidden_states, weight, bias, T, **kw)
    out = jax.block_until_ready(out)
    ref = attention_pooling_ref(hidden_states, weight, bias, T)

    assert out.shape == (B, T, D)
    assert jnp.allclose(out, ref, atol=1e-4, rtol=1e-4), "mismatch vs reference"


if __name__ == "__main__":
    key = jax.random.PRNGKey(0)
    k1, k2, k3 = jax.random.split(key, 3)

    # Case 1: module-default small shapes (single tile, Bt == B path).
    _run_case(k1, B=2, S=8, D=32, T=4)

    # Case 2: batch tiling + online softmax across multiple S tiles.
    _run_case(k2, B=8, S=64, D=128, T=3, seq_block=16)

    # Case 3: ragged S (S % Ts != 0) exercises the masked tail tile.
    _run_case(k3, B=8, S=40, D=128, T=2, seq_block=16)

    print("KERNEL_OK")
</pallas_src>

<mosaic_0001>
module attributes {stable_mosaic.version = 11 : i64} {
  func.func @_attention_pooling_kernel(%arg0: i32, %arg1: i32, %arg2: memref<2x32xf32, #tpu.memory_space<vmem>>, %arg3: memref<2x8x32xf32, #tpu.memory_space<vmem>>, %arg4: memref<2x32xf32, #tpu.memory_space<vmem>>, %arg5: memref<2x1xf32, #tpu.memory_space<vmem>>, %arg6: memref<2x1xf32, #tpu.memory_space<vmem>>, %arg7: memref<2x32xf32, #tpu.memory_space<vmem>>) attributes {dimension_semantics = [#tpu.dimension_semantics<parallel>, #tpu.dimension_semantics<arbitrary>], iteration_bounds = array<i64: 1, 1>, scalar_prefetch = 0 : i64, scratch_operands = 3 : i64, tpu.core_type = #tpu.core_type<tc>, window_params = [{transform_indices = @transform_0, window_bounds = array<i64: 2, 32>}, {transform_indices = @transform_1, window_bounds = array<i64: 2, 8, 32>}, {transform_indices = @transform_2, window_bounds = array<i64: 2, 32>}]} {
    %c0_i32 = arith.constant 0 : i32
    %0 = arith.cmpi eq, %arg1, %c0_i32 : i32
    %1 = arith.extui %0 : i1 to i32
    %c0_i32_0 = arith.constant 0 : i32
    %2 = arith.cmpi ne, %1, %c0_i32_0 : i32
    scf.if %2 {
      %cst_22 = arith.constant 0xFF800000 : f32
      %36 = vector.broadcast %cst_22 : f32 to vector<2x1xf32>
      %c0_23 = arith.constant 0 : index
      %c0_24 = arith.constant 0 : index
      %37 = vector.load %arg5[%c0_23, %c0_24] : memref<2x1xf32, #tpu.memory_space<vmem>>, vector<2x1xf32>
      tpu.vector_store %arg5[%c0_23, %c0_24], %36 {strides = array<i32>} : memref<2x1xf32, #tpu.memory_space<vmem>>, vector<2x1xf32>,
      %cst_25 = arith.constant 0.000000e+00 : f32
      %38 = vector.broadcast %cst_25 : f32 to vector<2x1xf32>
      %c0_26 = arith.constant 0 : index
      %c0_27 = arith.constant 0 : index
      %39 = vector.load %arg6[%c0_26, %c0_27] : memref<2x1xf32, #tpu.memory_space<vmem>>, vector<2x1xf32>
      tpu.vector_store %arg6[%c0_26, %c0_27], %38 {strides = array<i32>} : memref<2x1xf32, #tpu.memory_space<vmem>>, vector<2x1xf32>,
      %cst_28 = arith.constant 0.000000e+00 : f32
      %40 = vector.broadcast %cst_28 : f32 to vector<2x32xf32>
      %c0_29 = arith.constant 0 : index
      %c0_30 = arith.constant 0 : index
      %41 = vector.load %arg7[%c0_29, %c0_30] : memref<2x32xf32, #tpu.memory_space<vmem>>, vector<2x32xf32>
      tpu.vector_store %arg7[%c0_29, %c0_30], %40 {strides = array<i32>} : memref<2x32xf32, #tpu.memory_space<vmem>>, vector<2x32xf32>,
    } else {
    }
    %c0 = arith.constant 0 : index
    %c0_1 = arith.constant 0 : index
    %3 = vector.load %arg2[%c0, %c0_1] : memref<2x32xf32, #tpu.memory_space<vmem>>, vector<2x32xf32>
    %c0_2 = arith.constant 0 : index
    %c0_3 = arith.constant 0 : index
    %c0_4 = arith.constant 0 : index
    %4 = vector.load %arg3[%c0_2, %c0_3, %c0_4] : memref<2x8x32xf32, #tpu.memory_space<vmem>>, vector<2x8x32xf32>
    %5 = vector.shape_cast %3 : vector<2x32xf32> to vector<2x1x32xf32>
    %6 = vector.broadcast %5 : vector<2x1x32xf32> to vector<2x8x32xf32>
    %7 = arith.mulf %6, %4 : vector<2x8x32xf32>
    %cst = arith.constant dense<0.000000e+00> : vector<2x8xf32>
    %8 = vector.multi_reduction <add>, %7, %cst [2] : vector<2x8x32xf32> to vector<2x8xf32>
    %c0_5 = arith.constant 0 : index
    %c0_6 = arith.constant 0 : index
    %9 = vector.load %arg5[%c0_5, %c0_6] : memref<2x1xf32, #tpu.memory_space<vmem>>, vector<2x1xf32>
    %cst_7 = arith.constant dense<0xFF800000> : vector<2xf32>
    %10 = vector.multi_reduction <maximumf>, %8, %cst_7 [1] : vector<2x8xf32> to vector<2xf32>
    %11 = vector.shape_cast %10 : vector<2xf32> to vector<2x1xf32>
    %12 = arith.maximumf %9, %11 : vector<2x1xf32>
    %13 = arith.subf %9, %12 : vector<2x1xf32>
    %14 = math.exp %13 : vector<2x1xf32>
    %15 = vector.broadcast %12 : vector<2x1xf32> to vector<2x8xf32>
    %16 = arith.subf %8, %15 : vector<2x8xf32>
    %17 = math.exp %16 : vector<2x8xf32>
    %c0_8 = arith.constant 0 : index
    %c0_9 = arith.constant 0 : index
    %18 = vector.load %arg6[%c0_8, %c0_9] : memref<2x1xf32, #tpu.memory_space<vmem>>, vector<2x1xf32>
    %19 = arith.mulf %14, %18 : vector<2x1xf32>
    %cst_10 = arith.constant dense<0.000000e+00> : vector<2xf32>
    %20 = vector.multi_reduction <add>, %17, %cst_10 [1] : vector<2x8xf32> to vector<2xf32>
    %21 = vector.shape_cast %20 : vector<2xf32> to vector<2x1xf32>
    %22 = arith.addf %19, %21 : vector<2x1xf32>
    %c0_11 = arith.constant 0 : index
    %c0_12 = arith.constant 0 : index
    %23 = vector.load %arg6[%c0_11, %c0_12] : memref<2x1xf32, #tpu.memory_space<vmem>>, vector<2x1xf32>
    tpu.vector_store %arg6[%c0_11, %c0_12], %22 {strides = array<i32>} : memref<2x1xf32, #tpu.memory_space<vmem>>, vector<2x1xf32>,
    %24 = vector.shape_cast %17 : vector<2x8xf32> to vector<2x1x8xf32>
    "tpu.trace_start"() <{level = 10 : i32, message = "bqt,btd->bqd"}> : () -> ()
    %cst_13 = arith.constant dense<0.000000e+00> : vector<2x1x32xf32>
    %25 = tpu.matmul %24, %4, %cst_13 {dimension_numbers = #tpu.dot_dimension_numbers<[2], [1], [1], [2], [0, 0, 0, 1, 1, 2], [0], [0]>} : vector<2x1x8xf32>, vector<2x8x32xf32>, vector<2x1x32xf32> -> vector<2x1x32xf32>
    "tpu.trace_stop"() : () -> ()
    %26 = vector.shape_cast %25 : vector<2x1x32xf32> to vector<2x32xf32>
    %c0_14 = arith.constant 0 : index
    %c0_15 = arith.constant 0 : index
    %27 = vector.load %arg7[%c0_14, %c0_15] : memref<2x32xf32, #tpu.memory_space<vmem>>, vector<2x32xf32>
    %28 = vector.broadcast %14 : vector<2x1xf32> to vector<2x32xf32>
    %29 = arith.mulf %28, %27 : vector<2x32xf32>
    %30 = arith.addf %29, %26 : vector<2x32xf32>
    %c0_16 = arith.constant 0 : index
    %c0_17 = arith.constant 0 : index
    %31 = vector.load %arg7[%c0_16, %c0_17] : memref<2x32xf32, #tpu.memory_space<vmem>>, vector<2x32xf32>
    tpu.vector_store %arg7[%c0_16, %c0_17], %30 {strides = array<i32>} : memref<2x32xf32, #tpu.memory_space<vmem>>, vector<2x32xf32>,
    %c0_18 = arith.constant 0 : index
    %c0_19 = arith.constant 0 : index
    %32 = vector.load %arg5[%c0_18, %c0_19] : memref<2x1xf32, #tpu.memory_space<vmem>>, vector<2x1xf32>
    tpu.vector_store %arg5[%c0_18, %c0_19], %12 {strides = array<i32>} : memref<2x1xf32, #tpu.memory_space<vmem>>, vector<2x1xf32>,
    %c0_i32_20 = arith.constant 0 : i32
    %33 = arith.cmpi eq, %arg1, %c0_i32_20 : i32
    %34 = arith.extui %33 : i1 to i32
    %c0_i32_21 = arith.constant 0 : i32
    %35 = arith.cmpi ne, %34, %c0_i32_21 : i32
    scf.if %35 {
      %c0_22 = arith.constant 0 : index
      %c0_23 = arith.constant 0 : index
      %36 = vector.load %arg7[%c0_22, %c0_23] : memref<2x32xf32, #tpu.memory_space<vmem>>, vector<2x32xf32>
      %c0_24 = arith.constant 0 : index
      %c0_25 = arith.constant 0 : index
      %37 = vector.load %arg6[%c0_24, %c0_25] : memref<2x1xf32, #tpu.memory_space<vmem>>, vector<2x1xf32>
      %38 = vector.broadcast %37 : vector<2x1xf32> to vector<2x32xf32>
      %39 = arith.divf %36, %38 : vector<2x32xf32>
      %c0_26 = arith.constant 0 : index
      %c0_27 = arith.constant 0 : index
      %40 = vector.load %arg4[%c0_26, %c0_27] : memref<2x32xf32, #tpu.memory_space<vmem>>, vector<2x32xf32>
      tpu.vector_store %arg4[%c0_26, %c0_27], %39 {strides = array<i32>} : memref<2x32xf32, #tpu.memory_space<vmem>>, vector<2x32xf32>,
    } else {
    }
    return
  }
  func.func @transform_0(%arg0: i32, %arg1: i32) -> (i32, i32) {
    %c0_i32 = arith.constant 0 : i32
    %c0_i32_0 = arith.constant 0 : i32
    return %arg0, %c0_i32 : i32, i32
  }
  func.func @transform_1(%arg0: i32, %arg1: i32) -> (i32, i32, i32) {
    %c0_i32 = arith.constant 0 : i32
    %c0_i32_0 = arith.constant 0 : i32
    return %arg0, %arg1, %c0_i32 : i32, i32, i32
  }
  func.func @transform_2(%arg0: i32, %arg1: i32) -> (i32, i32) {
    %c0_i32 = arith.constant 0 : i32
    %c0_i32_0 = arith.constant 0 : i32
    return %arg0, %c0_i32 : i32, i32
  }
}

</mosaic_0001>

<bundles_post_ra>
// kernel: tpu_custom_call.1
= control target key start
LH: loop header
LB: loop body
LE: loop exit
PB: predicated region body
PF: predicated region fallthrough
CT: control target
= control target key end

     0   :  { %7 = vsyncpa [#allocation6], 0  ;;  %s501_s0 = inlined_call_operand.hbm [shape: f32[2,32], index: 0, kind: input, shape index: {}]   ;;  %s502_s1 = inlined_call_operand.hbm [shape: f32[2,8,32], index: 1, kind: input, shape index: {}]   ;;  %s503_s2 = inlined_call_operand.hbm [shape: f32[2,32], index: 2, kind: output, shape index: {}]  }
   0x1   :  { %8 = vsyncpa [#allocation9], 0 }
   0x2   :  { %9 = vsyncpa [#allocation7], 0  ;;  %s455_s9 = smov [#allocation5]   ;;  %s456_s11 = smov [#allocation8]  }
   0x3   :  { %s16_s10 = sshll.u32 %s455_s9, 4  ;;  %s25_s12 = sshll.u32 %s456_s11, 4  ;;  %s17_s10 = int_to_ptr.vmem [resolvable:$true] %s16_s10  ;;  %s26_s12 = int_to_ptr.vmem [resolvable:$true] %s25_s12 }
   0x4   :  { %s397_s13 = scalar_lea.vmem %s17_s10, 32  ;;  %p402_p1 = scmp.lt.s32.totalorder %s17_s10, %s17_s10 }
   0x5   :  { %p398_p0 = scmp.ne.s32.totalorder %s17_s10, %s397_s13  ;;  %p403_p2 = scmp.lt.s32.totalorder %s397_s13, %s397_s13 }
   0x7   :  { %p404_p3 = por %p403_p2, %p402_p1 }
   0x9   :  { %p405_p4 = pnand %p404_p3, %p398_p0 }
   0xb   :  { %408 = shalt.err (!%p405_p4)
}
   0xc   :  { %19 = dma.hbm_to_vmem [thread:$0]  %s501_s0, 32, %s17_s10, [#allocation6]  }
   0xd   :  { %s417_s16 = scalar_lea.vmem %s26_s12, 256  ;;  %p422_p6 = scmp.lt.s32.totalorder %s26_s12, %s26_s12 }
   0xe   :  { %p418_p5 = scmp.ne.s32.totalorder %s26_s12, %s417_s16  ;;  %p423_p7 = scmp.lt.s32.totalorder %s417_s16, %s417_s16 }
  0x10   :  { %p424_p8 = por %p423_p7, %p422_p6 }
  0x12   :  { %p425_p9 = pnand %p424_p8, %p418_p5 }
  0x14   :  { %428 = shalt.err (!%p425_p9)
}
  0x15   :  { %s457_s17 = smov 128   ;;  %s458_s18 = smov 8  }
  0x16   :  { %31 = dma.hbm_to_vmem [thread:$0]  %s502_s1, 256, %s26_s12, [#allocation9], %s457_s17, %s457_s17, %s458_s18  }
  0x17   :  { %449 = dma.done.wait [#allocation6], 32  }
  0x18   :  { %450 = vsyncadd [#allocation6], 4294967264 }
  0x19   :  { %451 = dma.done.wait [#allocation9], 256  }
  0x1a   :  { %452 = vsyncadd [#allocation9], 4294967040  ;;  %v62_v0 = vlaneseq  ;;  %v459_v1 = vmov 1966171168   ;;  %v48_v10 = vld [vmem:[#allocation8] sm:$0xff]  ;;  %vm85_vm0 = vcmask 261120  }
  0x1b   :  { %v60_v2 = vunpack.c.l.s4 %v459_v1  ;;  %v352_v7 = vld.sshfl [vmem:[#allocation5] sm:$0x11 pattern:$0x75316420]  ;;  %v49_v13 = vld [vmem:[#allocation8 + $0x8] sm:$0xff]  ;;  %vm42_vm1 = vcmask 1024  }
  0x1c   :  { %v63_v3 = vshrl.u32 %v62_v0, 7  ;;  %v58_v9 = vcombine.high %v352_v7, %v352_v7  ;;  %v460_v19 = vmov -inf   ;;  %v96_v20 = vand.u32 127, %v62_v0  ;;  %s464_s0 = smov [#allocation10]  }
  0x1d   :  { %v61_v4 = vunpack.c.0.s8 %v60_v2  ;;  %43 = vst.msk [vmem:[#allocation2] sm:$0x3] %vm42_vm1, %v460_v19  ;;  %vm105_vm2 = vcmask 1041409   ;;  %vm108_vm3 = vcmask 58368   ;;  %v461_v28 = vmov 0   ;;  %s342_s1 = sshll.u32 %s464_s0, 4  ;;  %s343_s1 = int_to_ptr.vmem [resolvable:$true] %s342_s1 }
  0x1e   :  { %v75_v6 = vsub.s32 0, %v63_v3  ;;  %v99_v22 = vsub.s32 %v96_v20, %v63_v3  ;;  %379 = vset.pattern.permute.xlu1 %v461_v28  ;;  %380 = vset.pattern.permute.xlu0 %v461_v28  ;;  %v462_v29 = vmov 0.0   ;;  %v126_v34 = vsub.s32 1, %v63_v3  ;;  %s429_s21 = scalar_lea.vmem %s343_s1, 32  ;;  %p434_p11 = scmp.lt.s32.totalorder %s343_s1, %s343_s1 }
  0x1f   :  { %v64_v5 = vsub.s32 %v61_v4, %v63_v3  ;;  %359 = vmatprep.subr.mxu0 %v462_v29  ;;  %44 = vst.msk [vmem:[#allocation3] sm:$0x3] %vm42_vm1, %v462_v29  ;;  %364 = vmatprep.subr.mxu1 %v462_v29  ;;  %vm463_vm4 = vmmov 0   ;;  %vm162_vm5 = vcmask 64512   ;;  %vm45_vm6 = vcmask 254976   ;;  %p430_p10 = scmp.ne.s32.totalorder %s343_s1, %s429_s21  ;;  %p435_p12 = scmp.lt.s32.totalorder %s429_s21, %s429_s21 }
  0x20   :  { %360 = vmatpush3.msra.mxu0 %v48_v10  ;;  %365 = vmatpush3.msra.mxu1 %v49_v13  ;;  %46 = vst.msk [vmem:[#allocation4] sm:$0x3] %vm45_vm6, %v462_v29 }
  0x21   :  { %v65_v8 = vrot.slane %v352_v7, %v64_v5  ;;  %v72_v12 = vrot.slane %v58_v9, %v64_v5  ;;  %361 = vmatprep.mubr.msk.f32.mxu0 %vm463_vm4, %v462_v29  ;;  %366 = vmatprep.mubr.msk.f32.mxu1 %vm463_vm4, %v462_v29  ;;  %p436_p13 = por %p435_p12, %p434_p11 }
  0x23   :  { %v76_v11 = vrot.slane %v65_v8, %v75_v6  ;;  %v80_v15 = vrot.slane %v72_v12, %v75_v6  ;;  %p437_p0 = pnand %p436_p13, %p430_p10 }
  0x24   :  { %v92_v30 = vld [vmem:[#allocation2] sm:$0x3] }
  0x25   :  { %v83_v14 = vmul.f32 %v76_v11, %v48_v10  ;;  %v84_v17 = vmul.f32 %v80_v15, %v49_v13 }
  0x26   :  { %v136_v52 = vld [vmem:[#allocation3] sm:$0x3] }
  0x27   :  { %v86_v16 = vsel %vm85_vm0, %v83_v14, 0.0  ;;  %v89_v18 = vsel %vm85_vm0, %v84_v17, 0.0  ;;  %v307_v0 = vld [vmem:[#allocation4] sm:$0x3] }
  0x28   :  { %87 = vadd.xlane.f32.xlu0 %v86_v16 }
  0x2c   :  { %90 = vadd.xlane.f32.xlu0 %v89_v18 }
  0xb1   :  { %v88_v21 = vpop.xlane.xlu0 %87 }
  0xb2   :  { %v100_v24 = vrot.slane %v88_v21, %v99_v22 }
  0xb5   :  { %v91_v23 = vpop.xlane.xlu0 %90 }
  0xb6   :  { %v104_v25 = vrot.slane %v91_v23, %v99_v22 }
  0xb8   :  { %v106_v26 = vsel %vm105_vm2, %v104_v25, %v100_v24 }
  0xb9   :  { %v109_v27 = vsel %vm108_vm3, %v106_v26, -inf }
  0xba   :  { %110 = vmax.xlane.f32.xlu1 %v109_v27 }
 0x143   :  { %v111_v31 = vpop.xlane.xlu1 %110 }
 0x144   :  { %v112_v32 = vmax.f32 %v92_v30, %v111_v31 }
 0x146   :  { %v113_v33 = vsub.f32 %v92_v30, %v112_v32  ;;  %322 = vst.msk [vmem:[#allocation2] sm:$0x3] %vm42_vm1, %v112_v32  ;;  %118 = vperm.xlu1 %379, %v112_v32  }
 0x148   :  { %v114_v50 = vmul.f32 1.442695, %v113_v33 }
 0x1c1   :  { %v119_v35 = vpop.permute.xlu1 %118 }
 0x1c2   :  { %v123_v36 = vrot.slane %v119_v35, %v75_v6  ;;  %v127_v37 = vrot.slane %v119_v35, %v126_v34 }
 0x1c4   :  { %v130_v38 = vsub.f32 %v88_v21, %v123_v36  ;;  %v131_v39 = vsub.f32 %v91_v23, %v127_v37 }
 0x1c6   :  { %v132_v40 = vmul.f32 1.442695, %v130_v38  ;;  %v134_v41 = vmul.f32 1.442695, %v131_v39 }
 0x1c8   :  { %381 = vpow2.f32 %v132_v40 }
 0x1c9   :  { %383 = vpow2.f32 %v134_v41 }
 0x1ca   :  { %385 = vpow2.f32 %v114_v50 }
 0x1d5   :  { %v382_v42 = vpop.eup %381 }
 0x1d6   :  { %v384_v43 = vpop.eup %383  ;;  %141 = vperm.xlu1 %379, %v382_v42  }
 0x1d7   :  { %144 = vperm.xlu0 %380, %v384_v43   ;;  %v386_v51 = vpop.eup %385 }
 0x1d8   :  { %v137_v53 = vmul.f32 %v386_v51, %v136_v52 }
 0x251   :  { %v142_v44 = vpop.permute.xlu1 %141 }
 0x252   :  { %v145_v45 = vpop.permute.xlu0 %144  ;;  %v149_v46 = vrot.slane %v142_v44, %v99_v22 }
 0x253   :  { %v153_v47 = vrot.slane %v145_v45, %v99_v22 }
 0x254   :  { %362 = vmatmul.mubr.msk.f32.vlgmr.msra.gmra.mxu0 %vm162_vm5, %v149_v46 }
 0x255   :  { %367 = vmatmul.mubr.msk.f32.vlgmr.msra.gmra.mxu1 %vm162_vm5, %v153_v47  ;;  %v154_v48 = vsel %vm105_vm2, %v153_v47, %v149_v46 }
 0x256   :  { %v156_v49 = vsel %vm108_vm3, %v154_v48, 0.0 }
 0x257   :  { %157 = vadd.xlane.f32.xlu1 %v156_v49 }
 0x2e0   :  { %v158_v54 = vpop.xlane.xlu1 %157 }
 0x2e1   :  { %v159_v55 = vadd.f32 %v158_v54, %v137_v53 }
 0x2e3   :  { %161 = vst.msk [vmem:[#allocation3] sm:$0x3] %vm42_vm1, %v159_v55 }
 0x2ea   :  { %v327_v56 = vld [vmem:[#allocation3] sm:$0x3] }
 0x2eb   :  { %330 = vperm.xlu0 %380, %v327_v56  }
 0x2ef   :  { %310 = vperm.xlu0 %380, %v386_v51  }
 0x314   :  { %v231_v57 = vpop.f32.mrf.mxu0 }
 0x315   :  { %v303_v58 = vpop.f32.mrf.mxu1 }
 0x316   :  { %v316_v59 = vrot.slane %v303_v58, 7  ;;  %v363_v60 = vpop.f32.mrf.mxu0 }
 0x317   :  { %v368_v61 = vpop.f32.mrf.mxu1 }
 0x318   :  { %v317_v62 = vsel %vm105_vm2, %v316_v59, %v231_v57 }
 0x366   :  { %v331_v63 = vpop.permute.xlu0 %330 }
 0x367   :  { %387 = vrcp.f32 %v331_v63 }
 0x36a   :  { %v311_v1 = vpop.permute.xlu0 %310 }
 0x36b   :  { %v313_v2 = vmul.f32 %v311_v1, %v307_v0 }
 0x36d   :  { %v319_v3 = vadd.f32 %v317_v62, %v313_v2 }
 0x36f   :  { %321 = vst.msk [vmem:[#allocation4] sm:$0x3] %vm45_vm6, %v319_v3 }
 0x374   :  { %v388_v4 = vpop.eup %387 }
 0x376   :  { %v326_v5 = vld [vmem:[#allocation4] sm:$0x3] }
 0x377   :  { %v334_v6 = vmul.f32 %v388_v4, %v326_v5 }
 0x379   :  { %335 = vst.msk [vmem:[#allocation10] sm:$0x3] %vm45_vm6, %v334_v6 }
 0x37a   :  { %440 = shalt.err (!%p437_p0)
}
 0x37b   :  { %345 = dma.vmem_to_hbm [thread:$0]  %s343_s1, 32, %s503_s2, [#allocation7]  }
 0x37c   :  { %453 = dma.done.wait [#allocation7], 32  }
 0x37d   :  { %454 = vsyncadd [#allocation7], 4294967264 }
 0x37e   :  { %349 = vsyncpa [#allocation6], 1 }
 0x37f   :  { %350 = vsyncpa [#allocation9], 1 }
 0x380   :  { %351 = vsyncpa [#allocation7], 1 }

</bundles_post_ra>
